<compile_context>
chip_gen: v6e
topology: v6e:2x2x1
jax: 0.10.0
libtpu: 0.0.40
codegen_flags: <defaults>
</compile_context>

<pallas_src>
import functools

import jax
import jax.numpy as jnp
from jax.experimental import pallas as pl
from jax.experimental.pallas import tpu as pltpu


def _decoder_mlp_kernel(x_ref, w1_ref, b1_ref, w2_ref, b2_ref, o_ref):
    # x_ref : (block_rows, pack*latent_dim)   lane-packed input rows
    # w1_ref: (pack*latent_dim, pack*hidden)  block-diagonal W1^T  (VMEM resident)
    # b1_ref: (1, pack*hidden)
    # w2_ref: (pack*hidden, pack*output_dim)  block-diagonal W2^T  (VMEM resident)
    # b2_ref: (1, pack*output_dim)
    # o_ref : (block_rows, pack*output_dim)
    x = x_ref[...]
    h = jnp.dot(x, w1_ref[...],
                preferred_element_type=jnp.float32,
                precision=jax.lax.Precision.HIGHEST)
    h = jnp.maximum(h + b1_ref[...], 0.0)                # bias + ReLU in f32
    y = jnp.dot(h.astype(w2_ref.dtype), w2_ref[...],
                preferred_element_type=jnp.float32,
                precision=jax.lax.Precision.HIGHEST)
    y = y + b2_ref[...]
    o_ref[...] = y.astype(o_ref.dtype)


def _pick_pack(n):
    """How many consecutive samples share one packed row (free reshape only)."""
    for p in (8, 4, 2):
        if n % p == 0:
            return p
    return 1


def _pick_block_rows(rows, pack, tile_samples):
    """Largest 128-multiple row block (single full-extent block for small N).
    Caps the row count so even the lane-padded (pack==1) case stays far under
    every generation's scoped-VMEM budget."""
    max_rows = max(128, min(tile_samples // pack, 2048))
    if rows <= max_rows:
        return rows                       # full-extent block: always legal
    return (max_rows // 128) * 128        # multiple of 128 -> (8,128)-friendly


@functools.partial(jax.jit, static_argnames=("tile_n",))
def decoder_forward(data, w1, b1, w2, b2, *, tile_n=8192):
    """data: [..., latent_dim] -> [..., output_dim] via fused 2-layer MLP.

    w1: (hidden, latent_dim), b1: (hidden,), w2: (output_dim, hidden),
    b2: (output_dim,)  -- PyTorch nn.Linear parameter layout.
    """
    latent_dim = data.shape[-1]
    hidden = w1.shape[0]
    output_dim = w2.shape[0]
    lead_shape = data.shape[:-1]

    x = data.reshape(-1, latent_dim)          # free (metadata) reshape
    n = x.shape[0]

    pack = _pick_pack(n)
    rows = n // pack
    x_packed = x.reshape(rows, pack * latent_dim)   # free row-major bitcast

    # Block-diagonal packed weights / tiled biases (tiny; built once per call).
    eye = jnp.eye(pack, dtype=w1.dtype)
    w1t_bd = jnp.kron(eye, w1.T)                        # (pack*L, pack*H)
    w2t_bd = jnp.kron(eye, w2.T)                        # (pack*H, pack*O)
    b1_row = jnp.tile(b1, pack).reshape(1, pack * hidden)
    b2_row = jnp.tile(b2, pack).reshape(1, pack * output_dim)

    block_rows = _pick_block_rows(rows, pack, tile_n)
    grid_rows = pl.cdiv(rows, block_rows)               # ragged last block OK

    itemsize = jnp.dtype(data.dtype).itemsize
    flops = 2 * n * (latent_dim * hidden + hidden * output_dim)
    bytes_accessed = (
        n * (latent_dim + output_dim) * itemsize
        + w1t_bd.size * jnp.dtype(w1.dtype).itemsize
        + w2t_bd.size * jnp.dtype(w2.dtype).itemsize
        + b1_row.size * jnp.dtype(b1.dtype).itemsize
        + b2_row.size * jnp.dtype(b2.dtype).itemsize)

    out_packed = pl.pallas_call(
        _decoder_mlp_kernel,
        out_shape=jax.ShapeDtypeStruct((rows, pack * output_dim), data.dtype),
        grid_spec=pltpu.PrefetchScalarGridSpec(
            num_scalar_prefetch=0,
            grid=(grid_rows,),
            in_specs=[
                # Pipelined, lane-packed input row tiles.
                pl.BlockSpec((block_rows, pack * latent_dim), lambda i: (i, 0)),
                # Weights / biases: whole-array, single-buffered VMEM residents.
                pl.BlockSpec(memory_space=pltpu.MemorySpace.VMEM),  # W1^T (bd)
                pl.BlockSpec(memory_space=pltpu.MemorySpace.VMEM),  # b1
                pl.BlockSpec(memory_space=pltpu.MemorySpace.VMEM),  # W2^T (bd)
                pl.BlockSpec(memory_space=pltpu.MemorySpace.VMEM),  # b2
            ],
            out_specs=pl.BlockSpec((block_rows, pack * output_dim),
                                   lambda i: (i, 0)),
        ),
        compiler_params=pltpu.CompilerParams(
            dimension_semantics=("parallel",),
            vmem_limit_bytes=32 * 1024 * 1024),
        cost_estimate=pl.CostEstimate(flops=flops, transcendentals=0,
                                      bytes_accessed=bytes_accessed),
    )(x_packed, w1t_bd, b1_row, w2t_bd, b2_row)

    # Free reshape back to the module's [..., output_dim] layout (row order is
    # preserved by the packing, so this is just metadata).
    return out_packed.reshape(*lead_shape, output_dim)


def init_decoder_params(key, latent_dim, output_dim, dtype=jnp.float32):
    """Mirrors utils.init_network_weights: normal(0, 0.1) weights, zero bias.
    Weights in PyTorch (out_features, in_features) layout, biases 1-D."""
    hidden = latent_dim // 2
    k1, k2 = jax.random.split(key)
    w1 = (0.1 * jax.random.normal(k1, (hidden, latent_dim))).astype(dtype)
    b1 = jnp.zeros((hidden,), dtype)
    w2 = (0.1 * jax.random.normal(k2, (output_dim, hidden))).astype(dtype)
    b2 = jnp.zeros((output_dim,), dtype)
    return w1, b1, w2, b2


def decoder_reference(data, w1, b1, w2, b2):
    h = jnp.maximum(data @ w1.T + b1, 0.0)
    return h @ w2.T + b2


if __name__ == "__main__":
    latent_dim = 32
    output_dim = 16

    key = jax.random.PRNGKey(0)
    k_params, k_bias, k_data, k_data2 = jax.random.split(key, 4)
    w1, b1, w2, b2 = init_decoder_params(k_params, latent_dim, output_dim)

    # --- small case matching the module's typical [batch, seq, latent] input ---
    batch, seq = 2, 8                        # N = 16 -> pack = 8, single tile
    data = jax.random.normal(k_data, (batch, seq, latent_dim), jnp.float32)
    out = decoder_forward(data, w1, b1, w2, b2)
    jax.block_until_ready(out)
    ref = decoder_reference(data, w1, b1, w2, b2)
    assert out.shape == (batch, seq, output_dim), out.shape
    assert jnp.allclose(out, ref, atol=1e-4, rtol=1e-4), float(
        jnp.max(jnp.abs(out - ref)))

    # --- larger case exercising tiling + ragged final block + nonzero biases ---
    kb1, kb2 = jax.random.split(k_bias)
    b1n = 0.1 * jax.random.normal(kb1, (latent_dim // 2,), jnp.float32)
    b2n = 0.1 * jax.random.normal(kb2, (output_dim,), jnp.float32)
    batch2, seq2 = 3, 250                    # N = 750 -> pack = 2, rows = 375
    data2 = jax.random.normal(k_data2, (batch2, seq2, latent_dim), jnp.float32)
    out2 = decoder_forward(data2, w1, b1n, w2, b2n, tile_n=256)  # 3 grid steps
    jax.block_until_ready(out2)
    ref2 = decoder_reference(data2, w1, b1n, w2, b2n)
    assert out2.shape == (batch2, seq2, output_dim), out2.shape
    assert jnp.allclose(out2, ref2, atol=1e-4, rtol=1e-4), float(
        jnp.max(jnp.abs(out2 - ref2)))

    # --- bf16 I/O path (halves the dominant HBM stream; f32 accumulation) ---
    data_bf = data2.astype(jnp.bfloat16)
    w1_bf, b1_bf = w1.astype(jnp.bfloat16), b1n.astype(jnp.bfloat16)
    w2_bf, b2_bf = w2.astype(jnp.bfloat16), b2n.astype(jnp.bfloat16)
    out_bf = decoder_forward(data_bf, w1_bf, b1_bf, w2_bf, b2_bf)
    jax.block_until_ready(out_bf)
    ref_bf = decoder_reference(data_bf.astype(jnp.float32),
                               w1_bf.astype(jnp.float32),
                               b1_bf.astype(jnp.float32),
                               w2_bf.astype(jnp.float32),
                               b2_bf.astype(jnp.float32))
    assert out_bf.shape == (batch2, seq2, output_dim), out_bf.shape
    assert jnp.allclose(out_bf.astype(jnp.float32), ref_bf,
                        atol=1e-2, rtol=1e-2), float(
        jnp.max(jnp.abs(out_bf.astype(jnp.float32) - ref_bf)))

    print("KERNEL_OK")
</pallas_src>

<mosaic_0001>
module attributes {stable_mosaic.version = 11 : i64} {
  func.func @_decoder_mlp_kernel(%arg0: i32, %arg1: memref<2x256xf32, #tpu.memory_space<vmem>>, %arg2: memref<256x128xf32, #tpu.memory_space<vmem>>, %arg3: memref<1x128xf32, #tpu.memory_space<vmem>>, %arg4: memref<128x128xf32, #tpu.memory_space<vmem>>, %arg5: memref<1x128xf32, #tpu.memory_space<vmem>>, %arg6: memref<2x128xf32, #tpu.memory_space<vmem>>) attributes {dimension_semantics = [#tpu.dimension_semantics<parallel>], iteration_bounds = array<i64: 1>, scalar_prefetch = 0 : i64, scratch_operands = 0 : i64, tpu.core_type = #tpu.core_type<tc>, window_params = [{transform_indices = @transform_0, window_bounds = array<i64: 2, 256>}, {pipeline_mode = #tpu.pipeline_mode<synchronous>, transform_indices = @transform_1, window_bounds = array<i64: 256, 128>}, {pipeline_mode = #tpu.pipeline_mode<synchronous>, transform_indices = @transform_2, window_bounds = array<i64: 1, 128>}, {pipeline_mode = #tpu.pipeline_mode<synchronous>, transform_indices = @transform_3, window_bounds = array<i64: 128, 128>}, {pipeline_mode = #tpu.pipeline_mode<synchronous>, transform_indices = @transform_4, window_bounds = array<i64: 1, 128>}, {transform_indices = @transform_5, window_bounds = array<i64: 2, 128>}]} {
    %c0 = arith.constant 0 : index
    %c0_0 = arith.constant 0 : index
    %0 = vector.load %arg1[%c0, %c0_0] : memref<2x256xf32, #tpu.memory_space<vmem>>, vector<2x256xf32>
    %c0_1 = arith.constant 0 : index
    %c0_2 = arith.constant 0 : index
    %1 = vector.load %arg2[%c0_1, %c0_2] : memref<256x128xf32, #tpu.memory_space<vmem>>, vector<256x128xf32>
    %cst = arith.constant dense<0.000000e+00> : vector<2x128xf32>
    %2 = tpu.matmul %0, %1, %cst {dimension_numbers = #tpu.dot_dimension_numbers<[1], [0], [0], [1], [0, 0, 1, 1], [], []>, precision = #tpu.contract_precision<fp32>} : vector<2x256xf32>, vector<256x128xf32>, vector<2x128xf32> -> vector<2x128xf32>
    %c0_3 = arith.constant 0 : index
    %c0_4 = arith.constant 0 : index
    %3 = vector.load %arg3[%c0_3, %c0_4] : memref<1x128xf32, #tpu.memory_space<vmem>>, vector<1x128xf32>
    %4 = vector.broadcast %3 : vector<1x128xf32> to vector<2x128xf32>
    %5 = arith.addf %2, %4 : vector<2x128xf32>
    %cst_5 = arith.constant 0.000000e+00 : f32
    %6 = vector.broadcast %cst_5 : f32 to vector<2x128xf32>
    %7 = arith.maximumf %5, %6 : vector<2x128xf32>
    %c0_6 = arith.constant 0 : index
    %c0_7 = arith.constant 0 : index
    %8 = vector.load %arg4[%c0_6, %c0_7] : memref<128x128xf32, #tpu.memory_space<vmem>>, vector<128x128xf32>
    %cst_8 = arith.constant dense<0.000000e+00> : vector<2x128xf32>
    %9 = tpu.matmul %7, %8, %cst_8 {dimension_numbers = #tpu.dot_dimension_numbers<[1], [0], [0], [1], [0, 0, 1, 1], [], []>, precision = #tpu.contract_precision<fp32>} : vector<2x128xf32>, vector<128x128xf32>, vector<2x128xf32> -> vector<2x128xf32>
    %c0_9 = arith.constant 0 : index
    %c0_10 = arith.constant 0 : index
    %10 = vector.load %arg5[%c0_9, %c0_10] : memref<1x128xf32, #tpu.memory_space<vmem>>, vector<1x128xf32>
    %11 = vector.broadcast %10 : vector<1x128xf32> to vector<2x128xf32>
    %12 = arith.addf %9, %11 : vector<2x128xf32>
    %c0_11 = arith.constant 0 : index
    %c0_12 = arith.constant 0 : index
    %13 = vector.load %arg6[%c0_11, %c0_12] : memref<2x128xf32, #tpu.memory_space<vmem>>, vector<2x128xf32>
    tpu.vector_store %arg6[%c0_11, %c0_12], %12 {strides = array<i32>} : memref<2x128xf32, #tpu.memory_space<vmem>>, vector<2x128xf32>,
    return
  }
  func.func @transform_0(%arg0: i32) -> (i32, i32) {
    %c0_i32 = arith.constant 0 : i32
    %c0_i32_0 = arith.constant 0 : i32
    return %arg0, %c0_i32 : i32, i32
  }
  func.func @transform_1(%arg0: i32) -> (i32, i32) {
    %c0_i32 = arith.constant 0 : i32
    %c0_i32_0 = arith.constant 0 : i32
    %c0_i32_1 = arith.constant 0 : i32
    return %c0_i32, %c0_i32_0 : i32, i32
  }
  func.func @transform_2(%arg0: i32) -> (i32, i32) {
    %c0_i32 = arith.constant 0 : i32
    %c0_i32_0 = arith.constant 0 : i32
    %c0_i32_1 = arith.constant 0 : i32
    return %c0_i32, %c0_i32_0 : i32, i32
  }
  func.func @transform_3(%arg0: i32) -> (i32, i32) {
    %c0_i32 = arith.constant 0 : i32
    %c0_i32_0 = arith.constant 0 : i32
    %c0_i32_1 = arith.constant 0 : i32
    return %c0_i32, %c0_i32_0 : i32, i32
  }
  func.func @transform_4(%arg0: i32) -> (i32, i32) {
    %c0_i32 = arith.constant 0 : i32
    %c0_i32_0 = arith.constant 0 : i32
    %c0_i32_1 = arith.constant 0 : i32
    return %c0_i32, %c0_i32_0 : i32, i32
  }
  func.func @transform_5(%arg0: i32) -> (i32, i32) {
    %c0_i32 = arith.constant 0 : i32
    %c0_i32_0 = arith.constant 0 : i32
    return %arg0, %c0_i32 : i32, i32
  }
}

</mosaic_0001>

<bundles_post_ra>
// kernel: tile.13
= control target key start
LH: loop header
LB: loop body
LE: loop exit
PB: predicated region body
PF: predicated region fallthrough
CT: control target
= control target key end

     0   :  { %s22_s0 = inlined_call_operand.vmem [shape: f32[16], index: 0, kind: input, shape index: {}]   ;;  %s23_s1 = inlined_call_operand.vmem [shape: f32[8,16], index: 1, kind: output, shape index: {}]  }
   0x1   :  { %v4_v0 = vld [vmem:[%s22_s0] ss:$0 sm:$0xff] }
   0x2   :  { %5 = vst [vmem:[%s23_s1] sm:$0xff] %v4_v0 }

// kernel: tile.14
= control target key start
LH: loop header
LB: loop body
LE: loop exit
PB: predicated region body
PF: predicated region fallthrough
CT: control target
= control target key end

     0   :  { %s69_s10 = smov 112   ;;  %s70_s11 = smov 80   ;;  %vm3_vm0 = vcmask 130048   ;;  %vm9_vm1 = vcmask 1048448   ;;  %vm15_vm2 = vcmask 917248   ;;  %vm21_vm3 = vcmask 786048   ;;  %s113_s0 = inlined_call_operand.vmem [shape: f32[8,16], index: 0, kind: input, shape index: {}]   ;;  %s114_s1 = inlined_call_operand.vmem [shape: f32[1,128], index: 1, kind: output, shape index: {}]  }
   0x1   :  { %v55_v0 = vld [vmem:[%s113_s0 + $0x7] sm:$0x1]   ;;  %v57_v1 = vld [vmem:[%s113_s0 + $0x5] sm:$0x1]   ;;  %v56_v2 = vld [vmem:[%s113_s0 + $0x6] sm:$0x1]  }
   0x2   :  { %7 = vrot.lane.b32.xlu0 %v55_v0, %s69_s10  ;;  %19 = vrot.lane.b32.xlu1 %v57_v1, %s70_s11  ;;  %v58_v3 = vld [vmem:[%s113_s0 + $0x4] sm:$0x1]   ;;  %v2_v4 = vld [vmem:[%s113_s0] sm:$0x1]   ;;  %s71_s18 = smov 96   ;;  %s72_s19 = smov 64  }
   0x3   :  { %4 = vst.msk [vmem:[#allocation0] sm:$0x1] %vm3_vm0, %v2_v4   ;;  %v59_v5 = vld [vmem:[%s113_s0 + $0x3] sm:$0x1]   ;;  %v60_v6 = vld [vmem:[%s113_s0 + $0x2] sm:$0x1]  }
   0x4   :  { %s73_s24 = smov 48   ;;  %s74_s25 = smov 32   ;;  %v61_v7 = vld [vmem:[%s113_s0 + $0x1] sm:$0x1]   ;;  %vm27_vm4 = vcmask 654848   ;;  %vm33_vm5 = vcmask 523648  }
   0x5   :  { %s75_s0 = smov 16   ;;  %vm39_vm6 = vcmask 392448   ;;  %vm45_vm7 = vcmask 261248  }
   0x6   :  { %13 = vrot.lane.b32.xlu0 %v56_v2, %s71_s18  ;;  %25 = vrot.lane.b32.xlu1 %v58_v3, %s72_s19 }
   0xa   :  { %31 = vrot.lane.b32.xlu0 %v59_v5, %s73_s24  ;;  %37 = vrot.lane.b32.xlu1 %v60_v6, %s74_s25 }
   0xe   :  { %43 = vrot.lane.b32.xlu0 %v61_v7, %s75_s0 }
  0x74   :  { %v8_v8 = vpop.permute.xlu0 %7   ;;  %v20_v9 = vpop.permute.xlu1 %19  }
  0x75   :  { %10 = vst.msk [vmem:[#allocation0] sm:$0x1] %vm9_vm1, %v8_v8  }
  0x78   :  { %v14_v10 = vpop.permute.xlu0 %13   ;;  %v26_v11 = vpop.permute.xlu1 %25  }
  0x79   :  { %16 = vst.msk [vmem:[#allocation0] sm:$0x1] %vm15_vm2, %v14_v10  }
  0x7a   :  { %22 = vst.msk [vmem:[#allocation0] sm:$0x1] %vm21_vm3, %v20_v9  }
  0x7b   :  { %28 = vst.msk [vmem:[#allocation0] sm:$0x1] %vm27_vm4, %v26_v11  }
  0x7c   :  { %v32_v12 = vpop.permute.xlu0 %31   ;;  %v38_v13 = vpop.permute.xlu1 %37  }
  0x7d   :  { %34 = vst.msk [vmem:[#allocation0] sm:$0x1] %vm33_vm5, %v32_v12  }
  0x7e   :  { %40 = vst.msk [vmem:[#allocation0] sm:$0x1] %vm39_vm6, %v38_v13  }
  0x80   :  { %v44_v14 = vpop.permute.xlu0 %43  }
  0x81   :  { %46 = vst.msk [vmem:[#allocation0] sm:$0x1] %vm45_vm7, %v44_v14  }
  0x88   :  { %v51_v15 = vld [vmem:[#allocation0] sm:$0x1] }
  0x89   :  { %54 = vst [vmem:[%s114_s1] sm:$0x1] %v51_v15 }

// kernel: decoder_forward.1
= control target key start
LH: loop header
LB: loop body
LE: loop exit
PB: predicated region body
PF: predicated region fallthrough
CT: control target
= control target key end

     0   :  { %vm2131_vm0 = vmmov 0   ;;  %s3279_s1 = inlined_call_operand.vmem [shape: f32[256,128], index: 1, kind: input, shape index: {}]   ;;  %s3280_s0 = inlined_call_operand.vmem [shape: f32[2,256], index: 0, kind: input, shape index: {}]   ;;  %s3281_s3 = inlined_call_operand.vmem [shape: f32[128,128], index: 3, kind: input, shape index: {}]   ;;  %s3282_s2 = inlined_call_operand.vmem [shape: f32[1,128], index: 2, kind: input, shape index: {}]   ;;  %s3283_s4 = inlined_call_operand.vmem [shape: f32[1,128], index: 4, kind: input, shape index: {}]   ;;  %s3284_s5 = inlined_call_operand.vmem [shape: f32[2,128], index: 5, kind: output, shape index: {}]  }
   0x1   :  { %v52_v0 = vld [vmem:[%s3279_s1 + $0xf8] sm:$0xff]  ;;  %v51_v2 = vld [vmem:[%s3279_s1 + $0xf0] sm:$0xff]  ;;  %v50_v7 = vld [vmem:[%s3279_s1 + $0xe8] sm:$0xff] }
   0x2   :  { %v36_v1 = vld [vmem:[%s3279_s1 + $0x78] sm:$0xff]  ;;  %v2171_v3 = vand.u32 4294901760, %v52_v0  ;;  %v2175_v5 = vand.u32 4294901760, %v51_v2  ;;  %v35_v6 = vld [vmem:[%s3279_s1 + $0x70] sm:$0xff]  ;;  %v34_v8 = vld [vmem:[%s3279_s1 + $0x68] sm:$0xff]  ;;  %v2188_v10 = vand.u32 4294901760, %v50_v7 }
   0x3   :  { %v2173_v4 = vand.u32 4294901760, %v36_v1  ;;  %v2186_v9 = vand.u32 4294901760, %v35_v6  ;;  %v2190_v11 = vand.u32 4294901760, %v34_v8  ;;  %v49_v12 = vld [vmem:[%s3279_s1 + $0xe0] sm:$0xff]  ;;  %v48_v14 = vld [vmem:[%s3279_s1 + $0xd8] sm:$0xff]  ;;  %v2219_v20 = vld [vmem:[%s3279_s1 + $0xd0] sm:$0xff] }
   0x4   :  { %v33_v13 = vld [vmem:[%s3279_s1 + $0x60] sm:$0xff]  ;;  %1606 = vmatprep.subr.mxu0 %v2171_v3  ;;  %v2202_v15 = vand.u32 4294901760, %v49_v12  ;;  %v2206_v17 = vand.u32 4294901760, %v48_v14  ;;  %v2209_v18 = vsub.f32 %v52_v0, %v2171_v3  ;;  %v2214_v19 = vld [vmem:[%s3279_s1 + $0x58] sm:$0xff]  ;;  %v2224_v21 = vld [vmem:[%s3279_s1 + $0x50] sm:$0xff]  ;;  %v2234_v24 = vand.u32 4294901760, %v2219_v20 }
   0x5   :  { %v2204_v16 = vand.u32 4294901760, %v33_v13  ;;  %1607 = vmatpush3.msra.mxu0 %v2173_v4  ;;  %v2228_v22 = vand.u32 4294901760, %v2214_v19  ;;  %v2231_v23 = vsub.f32 %v36_v1, %v2173_v4  ;;  %v2237_v25 = vsub.f32 %v51_v2, %v2175_v5  ;;  %v2242_v26 = vld [vmem:[%s3279_s1 + $0xc8] sm:$0xff]  ;;  %v2252_v28 = vld [vmem:[%s3279_s1 + $0xc0] sm:$0xff]  ;;  %v2304_v46 = vld [vmem:[%s3279_s1 + $0xb8] sm:$0xff] }
   0x6   :  { %v2247_v27 = vld [vmem:[%s3279_s1 + $0x48] sm:$0xff]  ;;  %1608 = vmatprep.subr.mxu0 %v2175_v5  ;;  %v3298_v29 = vand.u32 4294901760, %v2209_v18  ;;  %v2257_v30 = vand.u32 4294901760, %v2224_v21  ;;  %v2260_v31 = vsub.f32 %v35_v6, %v2186_v9  ;;  %v2263_v32 = vand.u32 4294901760, %v2242_v26  ;;  %v2277_v37 = vld [vmem:[%s3279_s1 + $0x40] sm:$0xff]  ;;  %v2317_v51 = vld [vmem:[%s3279_s1 + $0x38] sm:$0xff] }
   0x7   :  { %1609 = vmatpush3.msra.mxu0 %v2186_v9  ;;  %v3297_v33 = vand.u32 4294901760, %v2231_v23  ;;  %v3295_v34 = vand.u32 4294901760, %v2237_v25  ;;  %v2269_v35 = vsub.f32 %v50_v7, %v2188_v10  ;;  %v2272_v36 = vand.u32 4294901760, %v2247_v27  ;;  %v2327_v56 = vld [vmem:[%s3279_s1 + $0xb0] sm:$0xff]  ;;  %v2357_v2 = vld [vmem:[%s3279_s1 + $0xa8] sm:$0xff] }
   0x8   :  { %3366 = vst [vmem:[#allocation2_spill] sm:$0xff] %v2257_v30  ;;  %3367 = vst [vmem:[#allocation3_spill] sm:$0xff] %v2263_v32  ;;  %1610 = vmatprep.subr.mxu0 %v2188_v10  ;;  %v299_v38 = vsub.f32 %v2209_v18, %v3298_v29  ;;  %v3294_v39 = vand.u32 4294901760, %v2260_v31  ;;  %v2285_v40 = vsub.f32 %v34_v8, %v2190_v11  ;;  %v2288_v41 = vand.u32 4294901760, %v2252_v28  ;;  %v2342_v61 = vld [vmem:[%s3279_s1 + $0x30] sm:$0xff] }
   0x9   :  { %3368 = vst [vmem:[#allocation4_spill] sm:$0xff] %v2272_v36  ;;  %1611 = vmatpush3.msra.mxu0 %v2190_v11  ;;  %v187_v42 = vsub.f32 %v2231_v23, %v3297_v33  ;;  %v306_v43 = vsub.f32 %v2237_v25, %v3295_v34  ;;  %v3292_v44 = vand.u32 4294901760, %v2269_v35  ;;  %v2299_v45 = vsub.f32 %v49_v12, %v2202_v15  ;;  %v2493_v33 = vld [vmem:[%s3279_s1 + $0x88] sm:$0xff] }
   0xa   :  { %3369 = vst [vmem:[#allocation5_spill] sm:$0xff] %v2288_v41  ;;  %1612 = vmatprep.subr.mxu0 %v2202_v15  ;;  %v300_v47 = vand.u32 4294901760, %v299_v38  ;;  %v194_v48 = vsub.f32 %v2260_v31, %v3294_v39  ;;  %v3290_v49 = vand.u32 4294901760, %v2285_v40  ;;  %v2312_v50 = vand.u32 4294901760, %v2277_v37 }
   0xb   :  { %1613 = vmatpush3.msra.mxu0 %v2204_v16  ;;  %v188_v52 = vand.u32 4294901760, %v187_v42  ;;  %v307_v53 = vand.u32 4294901760, %v306_v43  ;;  %v313_v54 = vsub.f32 %v2269_v35, %v3292_v44  ;;  %v3289_v55 = vand.u32 4294901760, %v2299_v45  ;;  %v2466_v44 = vld [vmem:[%s3279_s1 + $0x90] sm:$0xff] }
   0xc   :  { %3370 = vst [vmem:[#allocation6_spill] sm:$0xff] %v2312_v50  ;;  %1614 = vmatprep.subr.mxu0 %v2206_v17  ;;  %1641 = vmatprep.subr.mxu1 %v300_v47  ;;  %v195_v57 = vand.u32 4294901760, %v194_v48  ;;  %v201_v58 = vsub.f32 %v2285_v40, %v3290_v49  ;;  %v2334_v59 = vsub.f32 %v33_v13, %v2204_v16  ;;  %v2337_v60 = vand.u32 4294901760, %v2304_v46  ;;  %v2371_v13 = vld [vmem:[%s3279_s1 + $0x28] sm:$0xff]  ;;  %v2450_v49 = vld [vmem:[%s3279_s1 + $0x18] sm:$0xff] }
   0xd   :  { %1615 = vmatpush3.msra.mxu0 %v2228_v22  ;;  %1642 = vmatpush3.msra.mxu1 %v188_v52  ;;  %v314_v62 = vand.u32 4294901760, %v313_v54  ;;  %v320_v63 = vsub.f32 %v2299_v45, %v3289_v55  ;;  %v2349_v0 = vsub.f32 %v48_v14, %v2206_v17  ;;  %v2352_v1 = vand.u32 4294901760, %v2317_v51 }
   0xe   :  { %3371 = vst [vmem:[#allocation7_spill] sm:$0xff] %v2337_v60  ;;  %1616 = vmatprep.subr.mxu0 %v2234_v24  ;;  %1643 = vmatprep.subr.mxu1 %v307_v53  ;;  %v202_v6 = vand.u32 4294901760, %v201_v58  ;;  %v3287_v7 = vand.u32 4294901760, %v2334_v59  ;;  %v2363_v8 = vsub.f32 %v2214_v19, %v2228_v22  ;;  %v2366_v12 = vand.u32 4294901760, %v2327_v56 }
   0xf   :  { %3372 = vst [vmem:[#allocation8_spill] sm:$0xff] %v2352_v1  ;;  %1617 = vmatpush3.msra.mxu0 %v2257_v30  ;;  %1644 = vmatpush3.msra.mxu1 %v195_v57  ;;  %v321_v14 = vand.u32 4294901760, %v320_v63  ;;  %v3285_v38 = vand.u32 4294901760, %v2349_v0  ;;  %v2377_v42 = vsub.f32 %v2219_v20, %v2234_v24  ;;  %v2380_v19 = vand.u32 4294901760, %v2342_v61  ;;  %v2397_v20 = vld [vmem:[%s3279_s1 + $0xa0] sm:$0xff] }
  0x10   :  { %3373 = vst [vmem:[#allocation9_spill] sm:$0xff] %v2366_v12  ;;  %1618 = vmatprep.subr.mxu0 %v2263_v32  ;;  %1645 = vmatprep.subr.mxu1 %v314_v62  ;;  %v208_v43 = vsub.f32 %v2334_v59, %v3287_v7  ;;  %v3286_v47 = vand.u32 4294901760, %v2363_v8  ;;  %v2389_v48 = vsub.f32 %v2224_v21, %v2257_v30  ;;  %v2392_v52 = vand.u32 4294901760, %v2357_v2 }
  0x11   :  { %3374 = vst [vmem:[#allocation10_spill] sm:$0xff] %v2380_v19  ;;  %1619 = vmatpush3.msra.mxu0 %v2272_v36  ;;  %1646 = vmatpush3.msra.mxu1 %v202_v6  ;;  %v327_v53 = vsub.f32 %v2349_v0, %v3285_v38  ;;  %v3288_v54 = vand.u32 4294901760, %v2377_v42  ;;  %v2406_v21 = vsub.f32 %v2242_v26, %v2263_v32  ;;  %v2409_v57 = vand.u32 4294901760, %v2371_v13  ;;  %v2423_v26 = vld [vmem:[%s3279_s1 + $0x20] sm:$0xff] }
  0x12   :  { %3375 = vst [vmem:[#allocation11_spill] sm:$0xff] %v2392_v52  ;;  %1620 = vmatprep.subr.mxu0 %v2288_v41  ;;  %1647 = vmatprep.subr.mxu1 %v321_v14  ;;  %v209_v58 = vand.u32 4294901760, %v208_v43  ;;  %v215_v62 = vsub.f32 %v2363_v8, %v3286_v47  ;;  %v3291_v63 = vand.u32 4294901760, %v2389_v48  ;;  %v2418_v6 = vsub.f32 %v2247_v27, %v2272_v36  ;;  %v2436_v27 = vld [vmem:[%s3279_s1 + $0x98] sm:$0xff] }
  0x13   :  { %3376 = vst [vmem:[#allocation12_spill] sm:$0xff] %v2409_v57  ;;  %1621 = vmatpush3.msra.mxu0 %v2312_v50  ;;  %v328_v38 = vand.u32 4294901760, %v327_v53  ;;  %v334_v14 = vsub.f32 %v2377_v42, %v3288_v54  ;;  %v3293_v43 = vand.u32 4294901760, %v2406_v21  ;;  %v2431_v47 = vand.u32 4294901760, %v2397_v20 }
  0x14   :  { %1648 = vmatpush3.msra.mxu1 %v209_v58  ;;  %1622 = vmatprep.subr.mxu0 %v2337_v60  ;;  %v216_v7 = vand.u32 4294901760, %v215_v62  ;;  %v222_v53 = vsub.f32 %v2389_v48, %v3291_v63  ;;  %v3296_v54 = vand.u32 4294901760, %v2418_v6  ;;  %v2445_v55 = vsub.f32 %v2252_v28, %v2288_v41 }
  0x15   :  { %3377 = vst [vmem:[#allocation13_spill] sm:$0xff] %v2431_v47  ;;  %1649 = vmatprep.subr.mxu1 %v328_v38  ;;  %1623 = vmatpush3.msra.mxu0 %v2352_v1  ;;  %v335_v58 = vand.u32 4294901760, %v334_v14  ;;  %v341_v62 = vsub.f32 %v2406_v21, %v3293_v43  ;;  %v2457_v63 = vand.u32 4294901760, %v2423_v26  ;;  %v2461_v28 = vsub.f32 %v2277_v37, %v2312_v50  ;;  %v2479_v37 = vld [vmem:[%s3279_s1 + $0x10] sm:$0xff] }
  0x16   :  { %1650 = vmatpush3.msra.mxu1 %v216_v7  ;;  %1624 = vmatprep.subr.mxu0 %v2366_v12  ;;  %v223_v38 = vand.u32 4294901760, %v222_v53  ;;  %v229_v14 = vsub.f32 %v2418_v6, %v3296_v54  ;;  %v3301_v43 = vand.u32 4294901760, %v2445_v55  ;;  %v2474_v39 = vand.u32 4294901760, %v2436_v27 }
  0x17   :  { %3378 = vst [vmem:[#allocation14_spill] sm:$0xff] %v2457_v63  ;;  %1651 = vmatprep.subr.mxu1 %v335_v58  ;;  %1625 = vmatpush3.msra.mxu0 %v2380_v19  ;;  %v342_v7 = vand.u32 4294901760, %v341_v62  ;;  %v3302_v53 = vand.u32 4294901760, %v2461_v28  ;;  %v2485_v34 = vsub.f32 %v2304_v46, %v2337_v60  ;;  %v2488_v54 = vand.u32 4294901760, %v2450_v49 }
  0x18   :  { %3379 = vst [vmem:[#allocation15_spill] sm:$0xff] %v2474_v39  ;;  %1652 = vmatpush3.msra.mxu1 %v223_v38  ;;  %1626 = vmatprep.subr.mxu0 %v2392_v52  ;;  %v230_v58 = vand.u32 4294901760, %v229_v14  ;;  %v348_v62 = vsub.f32 %v2445_v55, %v3301_v43  ;;  %v2501_v46 = vsub.f32 %v2317_v51, %v2352_v1  ;;  %v2504_v29 = vand.u32 4294901760, %v2466_v44  ;;  %v2521_v51 = vld [vmem:[%s3279_s1 + $0x8] sm:$0xff] }
  0x19   :  { %3380 = vst [vmem:[#allocation16_spill] sm:$0xff] %v2488_v54  ;;  %1653 = vmatprep.subr.mxu1 %v342_v7  ;;  %1627 = vmatpush3.msra.mxu0 %v2409_v57  ;;  %v236_v38 = vsub.f32 %v2461_v28, %v3302_v53  ;;  %v2513_v60 = vsub.f32 %v2327_v56, %v2366_v12  ;;  %v2516_v43 = vand.u32 4294901760, %v2479_v37  ;;  %v2530_v56 = vand.u32 4294901760, %v2493_v33  ;;  %v2535_v12 = vld [vmem:[%s3279_s1 + $0x80] sm:$0xff] }
  0x1a   :  { %3381 = vst [vmem:[#allocation17_spill] sm:$0xff] %v2504_v29  ;;  %1654 = vmatpush3.msra.mxu1 %v230_v58  ;;  %1628 = vmatprep.subr.mxu0 %v2431_v47  ;;  %v349_v7 = vand.u32 4294901760, %v348_v62  ;;  %v2527_v14 = vsub.f32 %v2342_v61, %v2380_v19  ;;  %v3385_v1 = vand.u32 4294901760, %v2485_v34  ;;  %v2544_v61 = vsub.f32 %v2357_v2, %v2392_v52  ;;  %v2549_v19 = vld [vmem:[%s3279_s1] sm:$0xff] }
  0x1b   :  { %3382 = vst [vmem:[#allocation18_spill] sm:$0xff] %v2516_v43  ;;  %3384 = vst [vmem:[#allocation20_spill] sm:$0xff] %v2530_v56  ;;  %1629 = vmatpush3.msra.mxu0 %v2457_v63  ;;  %v237_v58 = vand.u32 4294901760, %v236_v38  ;;  %v3387_v38 = vand.u32 4294901760, %v2501_v46  ;;  %v2557_v53 = vand.u32 4294901760, %v2521_v51  ;;  %v2561_v2 = vsub.f32 %v2371_v13, %v2409_v57 }
  0x1c   :  { %3383 = vst [vmem:[#allocation19_spill] sm:$0xff] %v2527_v14  ;;  %v355_v62 = vsub.f32 %v2485_v34, %v3385_v1  ;;  %3386 = vst [vmem:[#allocation21_spill] sm:$0xff] %v2544_v61  ;;  %1655 = vmatprep.subr.mxu1 %v349_v7  ;;  %1630 = vmatprep.subr.mxu0 %v2474_v39  ;;  %v1604_v52 = vld.sshfl [vmem:[%s3280_s0] sm:$0x33 pattern:$0x76325410] }
  0x1d   :  { %v243_v50 = vsub.f32 %v2501_v46, %v3387_v38  ;;  %3388 = vst [vmem:[#allocation22_spill] sm:$0xff] %v2557_v53  ;;  %1656 = vmatpush3.msra.mxu1 %v237_v58  ;;  %1631 = vmatpush3.msra.mxu0 %v2488_v54  ;;  %v3389_v41 = vand.u32 4294901760, %v2513_v60  ;;  %v3325_v1 = vand.u32 4294901760, %v2544_v61  ;;  %v2572_v36 = vand.u32 4294901760, %v2535_v12 }
  0x1e   :  { %v356_v7 = vand.u32 4294901760, %v355_v62  ;;  %1632 = vmatprep.subr.mxu0 %v2504_v29  ;;  %v3390_v13 = vand.u32 4294901760, %v2527_v14  ;;  %v2581_v62 = vsub.f32 %v2397_v20, %v2431_v47  ;;  %v2588_v30 = vand.u32 4294901760, %v2549_v19 }
  0x1f   :  { %v362_v38 = vsub.f32 %v2513_v60, %v3389_v41  ;;  %v244_v32 = vand.u32 4294901760, %v243_v50  ;;  %1633 = vmatpush3.msra.mxu0 %v2516_v43  ;;  %v369_v50 = vsub.f32 %v2544_v61, %v3325_v1  ;;  %v3391_v20 = vand.u32 4294901760, %v2561_v2 }
  0x20   :  { %v250_v57 = vsub.f32 %v2527_v14, %v3390_v13  ;;  %1657 = vmatprep.subr.mxu1 %v356_v7  ;;  %v2592_v13 = vsub.f32 %v2423_v26, %v2457_v63  ;;  %1634 = vmatprep.subr.mxu0 %v2530_v56  ;;  %v68_v47 = vcombine.high %v1604_v52, %v1604_v52  ;;  %v2601_v14 = vand.u32 4294901760, %v1604_v52 }
  0x21   :  { %v363_v41 = vand.u32 4294901760, %v362_v38  ;;  %1658 = vmatpush3.msra.mxu1 %v244_v32  ;;  %v257_v7 = vsub.f32 %v2561_v2, %v3391_v20  ;;  %v3330_v38 = vand.u32 4294901760, %v2581_v62  ;;  %v370_v1 = vand.u32 4294901760, %v369_v50  ;;  %1635 = vmatpush3.msra.mxu0 %v2557_v53 }
  0x22   :  { %v251_v58 = vand.u32 4294901760, %v250_v57  ;;  %v3331_v61 = vand.u32 4294901760, %v2592_v13  ;;  %3392 = vst [vmem:[#allocation23_spill] sm:$0xff] %v2601_v14  ;;  %v2605_v32 = vsub.f32 %v2436_v27, %v2474_v39  ;;  %1636 = vmatprep.subr.mxu0 %v2572_v36  ;;  %v2615_v50 = vsub.f32 %v2450_v49, %v2488_v54 }
  0x23   :  { %1659 = vmatprep.subr.mxu1 %v363_v41  ;;  %v258_v57 = vand.u32 4294901760, %v257_v7  ;;  %v376_v26 = vsub.f32 %v2581_v62, %v3330_v38  ;;  %v2611_v41 = vand.u32 4294901760, %v68_v47  ;;  %1637 = vmatpush3.msra.mxu0 %v2588_v30  ;;  %v2623_v20 = vsub.f32 %v1604_v52, %v2601_v14 }
  0x24   :  { %1660 = vmatpush3.msra.mxu1 %v251_v58  ;;  %v264_v27 = vsub.f32 %v2592_v13, %v3331_v61  ;;  %v2627_v7 = vsub.f32 %v2466_v44, %v2504_v29  ;;  %1676 = vmatprep.subr.mxu0 %v2209_v18  ;;  %v2636_v61 = vsub.f32 %v2479_v37, %v2516_v43  ;;  %v3394_v52 = vand.u32 4294901760, %v2605_v32 }
  0x25   :  { %3393 = vst [vmem:[#allocation24_spill] sm:$0xff] %v2611_v41  ;;  %1661 = vmatprep.subr.mxu1 %v370_v1  ;;  %v377_v38 = vand.u32 4294901760, %v376_v26  ;;  %v2630_v49 = vsub.f32 %v68_v47, %v2611_v41  ;;  %v3336_v1 = vand.u32 4294901760, %v2615_v50  ;;  %v3339_v44 = vand.u32 4294901760, %v2623_v20  ;;  %408 = vmatprep.mubr.f32.mxu1 %v2611_v41 }
  0x26   :  { %1662 = vmatpush3.msra.mxu1 %v258_v57  ;;  %v265_v58 = vand.u32 4294901760, %v264_v27  ;;  %v383_v54 = vsub.f32 %v2605_v32, %v3394_v52  ;;  %v2651_v27 = vsub.f32 %v2493_v33, %v2530_v56  ;;  %v2661_v41 = vsub.f32 %v2521_v51, %v2557_v53 }
  0x27   :  { %1663 = vmatprep.subr.mxu1 %v377_v38  ;;  %v271_v26 = vsub.f32 %v2615_v50, %v3336_v1  ;;  %v176_v57 = vsub.f32 %v2623_v20, %v3339_v44  ;;  %v3395_v38 = vand.u32 4294901760, %v2627_v7  ;;  %v3396_v1 = vand.u32 4294901760, %v2630_v49 }
  0x28   :  { %1664 = vmatpush3.msra.mxu1 %v265_v58  ;;  %v384_v52 = vand.u32 4294901760, %v383_v54  ;;  %v3397_v58 = vand.u32 4294901760, %v2636_v61  ;;  %v3349_v56 = vand.u32 4294901760, %v2651_v27  ;;  %v2673_v51 = vsub.f32 %v2535_v12, %v2572_v36 }
  0x29   :  { %v390_v47 = vsub.f32 %v2627_v7, %v3395_v38  ;;  %v170_v37 = vsub.f32 %v2630_v49, %v3396_v1  ;;  %v272_v33 = vand.u32 4294901760, %v271_v26  ;;  %v177_v44 = vand.u32 4294901760, %v176_v57 }
  0x2a   :  { %v278_v54 = vsub.f32 %v2636_v61, %v3397_v58  ;;  %1665 = vmatprep.subr.mxu1 %v384_v52  ;;  %v3348_v38 = vand.u32 4294901760, %v2661_v41  ;;  %v397_v1 = vsub.f32 %v2651_v27, %v3349_v56  ;;  %v2680_v26 = vsub.f32 %v2549_v19, %v2588_v30  ;;  %v3401_v58 = vld [vmem:[#allocation3_spill] sm:$0xff]  ;;  %v3414_v56 = vld [vmem:[#allocation16_spill] sm:$0xff] }
  0x2b   :  { %v391_v43 = vand.u32 4294901760, %v390_v47  ;;  %v171_v53 = vand.u32 4294901760, %v170_v37  ;;  %1666 = vmatpush3.msra.mxu1 %v272_v33  ;;  %v3347_v47 = vand.u32 4294901760, %v2673_v51 }
  0x2c   :  { %v279_v29 = vand.u32 4294901760, %v278_v54  ;;  %3398 = vst [vmem:[#allocation25_spill] sm:$0xff] %v2680_v26  ;;  %v285_v57 = vsub.f32 %v2661_v41, %v3348_v38  ;;  %v398_v12 = vand.u32 4294901760, %v397_v1  ;;  %v3346_v37 = vand.u32 4294901760, %v2680_v26  ;;  %v3402_v54 = vld [vmem:[#allocation21_spill] sm:$0xff]  ;;  %v3403_v1 = vld [vmem:[#allocation4_spill] sm:$0xff] }
  0x2d   :  { %1667 = vmatprep.subr.mxu1 %v391_v43  ;;  %172 = vmatprep.mubr.f32.mxu0 %v171_v53  ;;  %v404_v33 = vsub.f32 %v2673_v51, %v3347_v47  ;;  %v3399_v53 = vld [vmem:[#allocation2_spill] sm:$0xff]  ;;  %v3412_v47 = vld [vmem:[#allocation13_spill] sm:$0xff]  ;;  %v3413_v38 = vand.u32 4294901760, %v2209_v18  ;;  %v3421_v18 = vand.u32 4294901760, %v2269_v35 }
  0x2e   :  { %1668 = vmatpush3.msra.mxu1 %v279_v29  ;;  %178 = vmatmul.mubr.f32.vlgmr.msra.gmra.mxu0 %v177_v44  ;;  %v286_v52 = vand.u32 4294901760, %v285_v57  ;;  %v292_v19 = vsub.f32 %v2680_v26, %v3346_v37  ;;  %v3400_v44 = vld [vmem:[#allocation19_spill] sm:$0xff]  ;;  %v3404_v57 = vld [vmem:[#allocation5_spill] sm:$0xff]  ;;  %v3411_v37 = vld [vmem:[#allocation12_spill] sm:$0xff] }
  0x2f   :  { %1677 = vmatpush3.msra.mxu0 %v2231_v23  ;;  %1669 = vmatprep.subr.mxu1 %v398_v12  ;;  %v405_v29 = vand.u32 4294901760, %v404_v33  ;;  %v3405_v12 = vld [vmem:[#allocation6_spill] sm:$0xff]  ;;  %v3407_v33 = vld [vmem:[#allocation8_spill] sm:$0xff] }
  0x30   :  { %1678 = vmatprep.subr.mxu0 %v2237_v25  ;;  %1670 = vmatpush3.msra.mxu1 %v286_v52  ;;  %v293_v43 = vand.u32 4294901760, %v292_v19  ;;  %v3406_v52 = vld [vmem:[#allocation7_spill] sm:$0xff]  ;;  %v3408_v19 = vld [vmem:[#allocation9_spill] sm:$0xff] }
  0x31   :  { %1679 = vmatpush3.msra.mxu0 %v2260_v31  ;;  %545 = vmatprep.mubr.f32.mxu0 %v2630_v49 }
  0x32   :  { %1680 = vmatprep.subr.mxu0 %v2269_v35  ;;  %1671 = vmatprep.subr.mxu1 %v405_v29  ;;  %v3409_v29 = vld [vmem:[#allocation10_spill] sm:$0xff]  ;;  %v3427_v35 = vand.u32 4294901760, %v2623_v20 }
  0x33   :  { %1681 = vmatpush3.msra.mxu0 %v2285_v40  ;;  %1672 = vmatpush3.msra.mxu1 %v293_v43  ;;  %v3410_v43 = vld [vmem:[#allocation11_spill] sm:$0xff] }
  0x34   :  { %1682 = vmatprep.subr.mxu0 %v2299_v45  ;;  %410 = vmatmul.mubr.f32.vlgmr.msra.gmra.mxu1 %v2601_v14  ;;  %v3415_v14 = vand.u32 4294901760, %v2231_v23  ;;  %v3423_v23 = vand.u32 4294901760, %v2285_v40  ;;  %v3429_v40 = vand.u32 4294901760, %v2363_v8 }
  0x35   :  { %1683 = vmatpush3.msra.mxu0 %v2334_v59  ;;  %1711 = vmatprep.subr.mxu1 %v2171_v3 }
  0x36   :  { %1684 = vmatprep.subr.mxu0 %v2349_v0  ;;  %1712 = vmatpush3.msra.mxu1 %v2173_v4 }
  0x37   :  { %1685 = vmatpush3.msra.mxu0 %v2363_v8  ;;  %1713 = vmatprep.subr.mxu1 %v2175_v5  ;;  %v3447_v8 = vand.u32 4294901760, %v2636_v61 }
  0x38   :  { %1686 = vmatprep.subr.mxu0 %v2377_v42  ;;  %1714 = vmatpush3.msra.mxu1 %v2186_v9 }
  0x39   :  { %1687 = vmatpush3.msra.mxu0 %v2389_v48  ;;  %1715 = vmatprep.subr.mxu1 %v2188_v10 }
  0x3a   :  { %1688 = vmatprep.subr.mxu0 %v2406_v21  ;;  %1716 = vmatpush3.msra.mxu1 %v2190_v11 }
  0x3b   :  { %1689 = vmatpush3.msra.mxu0 %v2418_v6  ;;  %1717 = vmatprep.subr.mxu1 %v2202_v15 }
  0x3c   :  { %1690 = vmatprep.subr.mxu0 %v2445_v55  ;;  %1718 = vmatpush3.msra.mxu1 %v2204_v16 }
  0x3d   :  { %1691 = vmatpush3.msra.mxu0 %v2461_v28  ;;  %1719 = vmatprep.subr.mxu1 %v2206_v17 }
  0x3e   :  { %1692 = vmatprep.subr.mxu0 %v2485_v34  ;;  %1720 = vmatpush3.msra.mxu1 %v2228_v22 }
  0x3f   :  { %1693 = vmatpush3.msra.mxu0 %v2501_v46  ;;  %1721 = vmatprep.subr.mxu1 %v2234_v24 }
  0x40   :  { %1694 = vmatprep.subr.mxu0 %v2513_v60  ;;  %1722 = vmatpush3.msra.mxu1 %v3399_v53 }
  0x41   :  { %1695 = vmatpush3.msra.mxu0 %v3400_v44  ;;  %1723 = vmatprep.subr.mxu1 %v3401_v58 }
  0x42   :  { %1696 = vmatprep.subr.mxu0 %v3402_v54  ;;  %1724 = vmatpush3.msra.mxu1 %v3403_v1 }
  0x43   :  { %1697 = vmatpush3.msra.mxu0 %v2561_v2  ;;  %1725 = vmatprep.subr.mxu1 %v3404_v57 }
  0x44   :  { %1698 = vmatprep.subr.mxu0 %v2581_v62  ;;  %1726 = vmatpush3.msra.mxu1 %v3405_v12 }
  0x45   :  { %1699 = vmatpush3.msra.mxu0 %v2592_v13  ;;  %1727 = vmatprep.subr.mxu1 %v3406_v52 }
  0x46   :  { %1700 = vmatprep.subr.mxu0 %v2605_v32  ;;  %1728 = vmatpush3.msra.mxu1 %v3407_v33 }
  0x47   :  { %1701 = vmatpush3.msra.mxu0 %v2615_v50  ;;  %1729 = vmatprep.subr.mxu1 %v3408_v19 }
  0x48   :  { %1702 = vmatprep.subr.mxu0 %v2627_v7  ;;  %1730 = vmatpush3.msra.mxu1 %v3409_v29 }
  0x49   :  { %1703 = vmatpush3.msra.mxu0 %v2636_v61  ;;  %1731 = vmatprep.subr.mxu1 %v3410_v43 }
  0x4a   :  { %1704 = vmatprep.subr.mxu0 %v2651_v27  ;;  %1732 = vmatpush3.msra.mxu1 %v3411_v37  ;;  %v3416_v37 = vld [vmem:[#allocation17_spill] sm:$0xff] }
  0x4b   :  { %1705 = vmatpush3.msra.mxu0 %v2661_v41  ;;  %1733 = vmatprep.subr.mxu1 %v3412_v47  ;;  %v3417_v47 = vand.u32 4294901760, %v2237_v25  ;;  %v3424_v25 = vand.u32 4294901760, %v2299_v45  ;;  %v3430_v45 = vand.u32 4294901760, %v2377_v42  ;;  %v3448_v42 = vand.u32 4294901760, %v2651_v27 }
  0x4c   :  { %1706 = vmatprep.subr.mxu0 %v2673_v51  ;;  %1734 = vmatpush3.msra.mxu1 %v2457_v63  ;;  %v3418_v63 = vld [vmem:[#allocation18_spill] sm:$0xff] }
  0x4d   :  { %1707 = vmatpush3.msra.mxu0 %v2680_v26  ;;  %1735 = vmatprep.subr.mxu1 %v2474_v39  ;;  %v3419_v26 = vand.u32 4294901760, %v2260_v31  ;;  %v3420_v39 = vld [vmem:[#allocation20_spill] sm:$0xff]  ;;  %v3425_v31 = vand.u32 4294901760, %v2630_v49 }
  0x4e   :  { %548 = vmatmul.mubr.f32.vlgmr.msra.gmra.mxu0 %v2623_v20  ;;  %1746 = vmatprep.subr.mxu0 %v3413_v38  ;;  %v3422_v38 = vld [vmem:[#allocation22_spill] sm:$0xff]  ;;  %v945_v20 = vld [vmem:[%s3281_s3 + $0x58] sm:$0xff] }
  0x4f   :  { %1736 = vmatpush3.msra.mxu1 %v3414_v56  ;;  %1747 = vmatpush3.msra.mxu0 %v3415_v14  ;;  %v3426_v14 = vand.u32 4294901760, %v2334_v59  ;;  %v3431_v59 = vand.u32 4294901760, %v2389_v48  ;;  %v3449_v48 = vand.u32 4294901760, %v2661_v41  ;;  %v949_v41 = vld [vmem:[%s3281_s3 + $0x78] sm:$0xff] }
  0x50   :  { %1737 = vmatprep.subr.mxu1 %v3416_v37  ;;  %1748 = vmatprep.subr.mxu0 %v3417_v47  ;;  %v944_v47 = vld [vmem:[%s3281_s3 + $0x50] sm:$0xff] }
  0x51   :  { %1738 = vmatpush3.msra.mxu1 %v3418_v63  ;;  %1749 = vmatpush3.msra.mxu0 %v3419_v26  ;;  %v3428_v26 = vand.u32 4294901760, %v2349_v0  ;;  %v3432_v0 = vand.u32 4294901760, %v2406_v21  ;;  %v3450_v21 = vld [vmem:[#allocation12_spill] sm:$0xff] }
  0x52   :  { %1739 = vmatprep.subr.mxu1 %v3420_v39  ;;  %1750 = vmatprep.subr.mxu0 %v3421_v18 }
  0x53   :  { %1740 = vmatpush3.msra.mxu1 %v3422_v38  ;;  %1751 = vmatpush3.msra.mxu0 %v3423_v23 }
  0x54   :  { %1741 = vmatprep.subr.mxu1 %v2572_v36  ;;  %1752 = vmatprep.subr.mxu0 %v3424_v25 }
  0x55   :  { %1742 = vmatpush3.msra.mxu1 %v2588_v30  ;;  %652 = vmatprep.mubr.f32.mxu1 %v3425_v31 }
  0x56   :  { %1753 = vmatpush3.msra.mxu0 %v3426_v14  ;;  %656 = vmatmul.mubr.f32.vlgmr.msra.gmra.mxu1 %v3427_v35 }
  0x57   :  { %1754 = vmatprep.subr.mxu0 %v3428_v26  ;;  %1781 = vmatprep.subr.mxu1 %v2171_v3  ;;  %v3433_v3 = vand.u32 4294901760, %v2418_v6  ;;  %v3451_v6 = vand.u32 4294901760, %v2673_v51  ;;  %v2891_v51 = vand.u32 4294901760, %v945_v20 }
  0x58   :  { %1755 = vmatpush3.msra.mxu0 %v3429_v40  ;;  %1782 = vmatpush3.msra.mxu1 %v2173_v4  ;;  %v3434_v4 = vand.u32 4294901760, %v2445_v55  ;;  %v3445_v55 = vand.u32 4294901760, %v2615_v50  ;;  %v2866_v50 = vand.u32 4294901760, %v949_v41 }
  0x59   :  { %1756 = vmatprep.subr.mxu0 %v3430_v45  ;;  %1783 = vmatprep.subr.mxu1 %v2175_v5  ;;  %v3435_v5 = vand.u32 4294901760, %v2461_v28  ;;  %v3452_v28 = vld [vmem:[#allocation13_spill] sm:$0xff] }
  0x5a   :  { %1757 = vmatpush3.msra.mxu0 %v3431_v59  ;;  %1784 = vmatpush3.msra.mxu1 %v2186_v9  ;;  %v3436_v9 = vand.u32 4294901760, %v2485_v34  ;;  %v3444_v34 = vand.u32 4294901760, %v2605_v32  ;;  %v3458_v32 = vld [vmem:[#allocation15_spill] sm:$0xff] }
  0x5b   :  { %1758 = vmatprep.subr.mxu0 %v3432_v0  ;;  %1785 = vmatprep.subr.mxu1 %v2188_v10  ;;  %v3437_v10 = vand.u32 4294901760, %v2501_v46  ;;  %v3453_v46 = vld [vmem:[#allocation25_spill] sm:$0xff] }
  0x5c   :  { %1759 = vmatpush3.msra.mxu0 %v3433_v3  ;;  %1786 = vmatpush3.msra.mxu1 %v2190_v11  ;;  %v3438_v11 = vand.u32 4294901760, %v2513_v60  ;;  %v3446_v60 = vand.u32 4294901760, %v2627_v7  ;;  %v3454_v61 = vand.u32 4294901760, %v3453_v46  ;;  %v2130_v7 = vmov 0.0  }
  0x5d   :  { %1760 = vmatprep.subr.mxu0 %v3434_v4  ;;  %1787 = vmatprep.subr.mxu1 %v2202_v15  ;;  %v3439_v15 = vand.u32 4294901760, %v3400_v44  ;;  %v942_v4 = vld [vmem:[%s3281_s3 + $0x40] sm:$0xff] }
  0x5e   :  { %1761 = vmatpush3.msra.mxu0 %v3435_v5  ;;  %1788 = vmatpush3.msra.mxu1 %v2204_v16  ;;  %v3440_v16 = vand.u32 4294901760, %v3402_v54 }
  0x5f   :  { %1762 = vmatprep.subr.mxu0 %v3436_v9  ;;  %1789 = vmatprep.subr.mxu1 %v2206_v17  ;;  %v3441_v17 = vand.u32 4294901760, %v2561_v2  ;;  %v3455_v2 = vld [vmem:[#allocation24_spill] sm:$0xff] }
  0x60   :  { %1763 = vmatpush3.msra.mxu0 %v3437_v10  ;;  %1790 = vmatpush3.msra.mxu1 %v2228_v22  ;;  %v3442_v22 = vand.u32 4294901760, %v2581_v62  ;;  %v3456_v62 = vld [vmem:[#allocation14_spill] sm:$0xff]  ;;  %v2964_v10 = vand.u32 4294901760, %v942_v4 }
  0x61   :  { %1764 = vmatprep.subr.mxu0 %v3438_v11  ;;  %1791 = vmatprep.subr.mxu1 %v2234_v24  ;;  %v3443_v24 = vand.u32 4294901760, %v2592_v13  ;;  %v3457_v13 = vld [vmem:[#allocation23_spill] sm:$0xff]  ;;  %v941_v11 = vld [vmem:[%s3281_s3 + $0x38] sm:$0xff] }
  0x62   :  { %1765 = vmatpush3.msra.mxu0 %v3439_v15  ;;  %1792 = vmatpush3.msra.mxu1 %v3399_v53 }
  0x63   :  { %1766 = vmatprep.subr.mxu0 %v3440_v16  ;;  %1793 = vmatprep.subr.mxu1 %v3401_v58  ;;  %v2904_v58 = vand.u32 4294901760, %v944_v47  ;;  %v2973_v16 = vsub.f32 %v942_v4, %v2964_v10  ;;  %v934_v4 = vld [vmem:[%s3281_s3] sm:$0xff] }
  0x64   :  { %1767 = vmatpush3.msra.mxu0 %v3441_v17  ;;  %1794 = vmatpush3.msra.mxu1 %v3403_v1  ;;  %v2975_v17 = vand.u32 4294901760, %v941_v11 }
  0x65   :  { %1768 = vmatprep.subr.mxu0 %v3442_v22  ;;  %1795 = vmatprep.subr.mxu1 %v3404_v57  ;;  %v940_v22 = vld [vmem:[%s3281_s3 + $0x30] sm:$0xff] }
  0x66   :  { %1769 = vmatpush3.msra.mxu0 %v3443_v24  ;;  %1796 = vmatpush3.msra.mxu1 %v3405_v12  ;;  %v2915_v12 = vsub.f32 %v945_v20, %v2891_v51 }
  0x67   :  { %1770 = vmatprep.subr.mxu0 %v3444_v34  ;;  %1797 = vmatprep.subr.mxu1 %v3406_v52  ;;  %v3363_v34 = vand.u32 4294901760, %v2973_v16 }
  0x68   :  { %1771 = vmatpush3.msra.mxu0 %v3445_v55  ;;  %1798 = vmatpush3.msra.mxu1 %v3407_v33  ;;  %v2985_v55 = vsub.f32 %v941_v11, %v2975_v17 }
  0x69   :  { %1772 = vmatprep.subr.mxu0 %v3446_v60  ;;  %1799 = vmatprep.subr.mxu1 %v3408_v19  ;;  %v2924_v19 = vsub.f32 %v944_v47, %v2904_v58  ;;  %v2987_v60 = vand.u32 4294901760, %v940_v22  ;;  %v936_v47 = vld [vmem:[%s3281_s3 + $0x10] sm:$0xff] }
  0x6a   :  { %1773 = vmatpush3.msra.mxu0 %v3447_v8  ;;  %1800 = vmatpush3.msra.mxu1 %v3409_v29  ;;  %v939_v8 = vld [vmem:[%s3281_s3 + $0x28] sm:$0xff] }
  0x6b   :  { %1774 = vmatprep.subr.mxu0 %v3448_v42  ;;  %1801 = vmatprep.subr.mxu1 %v3410_v43  ;;  %v3365_v31 = vand.u32 4294901760, %v2924_v19  ;;  %v1101_v42 = vsub.f32 %v2973_v16, %v3363_v34 }
  0x6c   :  { %1775 = vmatpush3.msra.mxu0 %v3449_v48  ;;  %1802 = vmatpush3.msra.mxu1 %v3450_v21  ;;  %v3362_v48 = vand.u32 4294901760, %v2985_v55  ;;  %v3000_v21 = vsub.f32 %v940_v22, %v2987_v60 }
  0x6d   :  { %1776 = vmatprep.subr.mxu0 %v3451_v6  ;;  %1803 = vmatprep.subr.mxu1 %v3452_v28  ;;  %v1087_v3 = vsub.f32 %v2924_v19, %v3365_v31  ;;  %v3002_v6 = vand.u32 4294901760, %v939_v8  ;;  %v938_v28 = vld [vmem:[%s3281_s3 + $0x20] sm:$0xff]  ;;  %v1102_v46 = vand.u32 4294901760, %v1101_v42 }
  0x6e   :  { %1777 = vmatpush3.msra.mxu0 %v3454_v61  ;;  %822 = vmatprep.mubr.f32.mxu0 %v3455_v2  ;;  %v1108_v61 = vsub.f32 %v2985_v55, %v3362_v48 }
  0x6f   :  { %1804 = vmatpush3.msra.mxu1 %v3456_v62  ;;  %824 = vmatmul.mubr.f32.vlgmr.msra.gmra.mxu0 %v3457_v13  ;;  %v1088_v15 = vand.u32 4294901760, %v1087_v3  ;;  %v3015_v62 = vsub.f32 %v939_v8, %v3002_v6 }
  0x70   :  { %1805 = vmatprep.subr.mxu1 %v3458_v32  ;;  %926 = vmatprep.mubr.f32.mxu1 %v3455_v2  ;;  %v3361_v2 = vand.u32 4294901760, %v3000_v21  ;;  %v937_v32 = vld [vmem:[%s3281_s3 + $0x18] sm:$0xff] }
  0x71   :  { %1806 = vmatpush3.msra.mxu1 %v3414_v56  ;;  %1918 = vmatprep.subr.mxu0 %v2130_v7 }
  0x72   :  { %1807 = vmatprep.subr.mxu1 %v3416_v37  ;;  %v943_v37 = vld [vmem:[%s3281_s3 + $0x48] sm:$0xff]  ;;  %1919 = vmatpush3.msra.mxu0 %v2866_v50 }
  0x73   :  { %1808 = vmatpush3.msra.mxu1 %v3418_v63  ;;  %v948_v63 = vld [vmem:[%s3281_s3 + $0x70] sm:$0xff]  ;;  %v2906_v54 = vand.u32 4294901760, %v943_v37  ;;  %1920 = vmatprep.subr.mxu0 %v2130_v7 }
  0x74   :  { %1809 = vmatprep.subr.mxu1 %v3420_v39  ;;  %v2872_v39 = vsub.f32 %v949_v41, %v2866_v50  ;;  %v2874_v56 = vand.u32 4294901760, %v948_v63  ;;  %v1109_v41 = vand.u32 4294901760, %v1108_v61  ;;  %1950 = vmatprep.mubr.msk.f32.mxu0 %vm2131_vm0, %v2130_v7 }
  0x75   :  { %1810 = vmatpush3.msra.mxu1 %v3422_v38  ;;  %v2927_v29 = vsub.f32 %v943_v37, %v2906_v54  ;;  %v1079_v38 = vand.u32 4294901760, %v2915_v12 }
  0x76   :  { %1811 = vmatprep.subr.mxu1 %v2572_v36  ;;  %v946_v36 = vld [vmem:[%s3281_s3 + $0x60] sm:$0xff]  ;;  %v1051_v53 = vand.u32 4294901760, %v2872_v39  ;;  %v2901_v44 = vsub.f32 %v948_v63, %v2874_v56  ;;  %1921 = vmatpush3.msra.mxu0 %v2874_v56  ;;  %v1115_v63 = vsub.f32 %v3000_v21, %v3361_v2 }
  0x77   :  { %1812 = vmatpush3.msra.mxu1 %v2588_v30  ;;  %v947_v30 = vld [vmem:[%s3281_s3 + $0x68] sm:$0xff]  ;;  %v2888_v27 = vand.u32 4294901760, %v946_v36  ;;  %1922 = vmatprep.subr.mxu0 %v2130_v7  ;;  %v1080_v40 = vsub.f32 %v2915_v12, %v1079_v38  ;;  %v3364_v45 = vand.u32 4294901760, %v2927_v29 }
  0x78   :  { %928 = vmatmul.mubr.f32.vlgmr.msra.gmra.mxu1 %v3457_v13  ;;  %1953 = vmatprep.subr.mxu1 %v2130_v7  ;;  %v2886_v49 = vand.u32 4294901760, %v947_v30  ;;  %v1052_v52 = vsub.f32 %v2872_v39, %v1051_v53  ;;  %v1058_v33 = vand.u32 4294901760, %v2901_v44  ;;  %v3019_v13 = vand.u32 4294901760, %v938_v28 }
  0x79   :  { %v2912_v57 = vsub.f32 %v946_v36, %v2888_v27  ;;  %v1081_v5 = vand.u32 4294901760, %v1080_v40  ;;  %v1094_v9 = vsub.f32 %v2927_v29, %v3364_v45  ;;  %v3029_v36 = vand.u32 4294901760, %v937_v32  ;;  %1985 = vmatprep.mubr.msk.f32.mxu1 %vm2131_vm0, %v2130_v7 }
  0x7a   :  { %v2909_v1 = vsub.f32 %v947_v30, %v2886_v49  ;;  %v1053_v23 = vand.u32 4294901760, %v1052_v52  ;;  %v1059_v25 = vsub.f32 %v2901_v44, %v1058_v33  ;;  %1923 = vmatpush3.msra.mxu0 %v2886_v49  ;;  %v3360_v30 = vand.u32 4294901760, %v3015_v62 }
  0x7b   :  { %v1072_v18 = vand.u32 4294901760, %v2912_v57  ;;  %1924 = vmatprep.subr.mxu0 %v2130_v7  ;;  %v1095_v24 = vand.u32 4294901760, %v1094_v9  ;;  %v3034_v20 = vsub.f32 %v938_v28, %v3019_v13  ;;  %v1116_v37 = vand.u32 4294901760, %v1115_v63 }
  0x7c   :  { %v1065_v43 = vand.u32 4294901760, %v2909_v1  ;;  %1954 = vmatpush3.msra.mxu1 %v1053_v23  ;;  %v1060_v26 = vand.u32 4294901760, %v1059_v25  ;;  %1925 = vmatpush3.msra.mxu0 %v2888_v27  ;;  %v1122_v52 = vsub.f32 %v3015_v62, %v3360_v30  ;;  %v3044_v23 = vsub.f32 %v937_v32, %v3029_v36 }
  0x7d   :  { %v1073_v35 = vsub.f32 %v2912_v57, %v1072_v18  ;;  %1955 = vmatprep.subr.mxu1 %v2130_v7  ;;  %1926 = vmatprep.subr.mxu0 %v2130_v7  ;;  %v3046_v25 = vand.u32 4294901760, %v936_v47 }
  0x7e   :  { %v1066_v14 = vsub.f32 %v2909_v1, %v1065_v43  ;;  %1956 = vmatpush3.msra.mxu1 %v1060_v26  ;;  %1927 = vmatpush3.msra.mxu0 %v2891_v51  ;;  %v1123_v26 = vand.u32 4294901760, %v1122_v52  ;;  %v3358_v40 = vand.u32 4294901760, %v3044_v23 }
  0x7f   :  { %v1074_v0 = vand.u32 4294901760, %v1073_v35  ;;  %1957 = vmatprep.subr.mxu1 %v2130_v7  ;;  %1928 = vmatprep.subr.mxu0 %v2130_v7  ;;  %v935_v35 = vld [vmem:[%s3281_s3 + $0x8] sm:$0xff] }
  0x80   :  { %v1067_v59 = vand.u32 4294901760, %v1066_v14  ;;  %1929 = vmatpush3.msra.mxu0 %v2904_v58  ;;  %v3359_v14 = vand.u32 4294901760, %v3034_v20 }
  0x81   :  { %1930 = vmatprep.subr.mxu0 %v2130_v7 }
  0x82   :  { %1958 = vmatpush3.msra.mxu1 %v1067_v59  ;;  %1931 = vmatpush3.msra.mxu0 %v2906_v54  ;;  %v3057_v59 = vsub.f32 %v936_v47, %v3046_v25  ;;  %v1129_v3 = vsub.f32 %v3034_v20, %v3359_v14 }
  0x83   :  { %1959 = vmatprep.subr.mxu1 %v2130_v7  ;;  %1932 = vmatprep.subr.mxu0 %v2130_v7 }
  0x84   :  { %1960 = vmatpush3.msra.mxu1 %v1074_v0  ;;  %1933 = vmatpush3.msra.mxu0 %v2964_v10  ;;  %v3059_v0 = vand.u32 4294901760, %v935_v35  ;;  %v3357_v9 = vand.u32 4294901760, %v3057_v59  ;;  %v1130_v22 = vand.u32 4294901760, %v1129_v3 }
  0x85   :  { %1961 = vmatprep.subr.mxu1 %v2130_v7  ;;  %1934 = vmatprep.subr.mxu0 %v2130_v7 }
  0x86   :  { %1962 = vmatpush3.msra.mxu1 %v1081_v5  ;;  %1935 = vmatpush3.msra.mxu0 %v2975_v17  ;;  %v1136_v5 = vsub.f32 %v3044_v23, %v3358_v40  ;;  %v3075_v11 = vsub.f32 %v935_v35, %v3059_v0  ;;  %v1143_v8 = vsub.f32 %v3057_v59, %v3357_v9 }
  0x87   :  { %1963 = vmatprep.subr.mxu1 %v2130_v7  ;;  %1936 = vmatprep.subr.mxu0 %v2130_v7 }
  0x88   :  { %1964 = vmatpush3.msra.mxu1 %v1088_v15  ;;  %1937 = vmatpush3.msra.mxu0 %v2987_v60  ;;  %v3077_v15 = vand.u32 4294901760, %v934_v4  ;;  %v3356_v42 = vand.u32 4294901760, %v3075_v11 }
  0x89   :  { %1965 = vmatprep.subr.mxu1 %v2130_v7  ;;  %1938 = vmatprep.subr.mxu0 %v2130_v7 }
  0x8a   :  { %1966 = vmatpush3.msra.mxu1 %v1095_v24  ;;  %1939 = vmatpush3.msra.mxu0 %v3002_v6  ;;  %v1137_v24 = vand.u32 4294901760, %v1136_v5  ;;  %v3087_v28 = vsub.f32 %v934_v4, %v3077_v15  ;;  %v1150_v61 = vsub.f32 %v3075_v11, %v3356_v42  ;;  %v1603_v5 = vld [vmem:[%s3282_s2] ss:$0 sm:$0xff] }
  0x8b   :  { %1967 = vmatprep.subr.mxu1 %v2130_v7  ;;  %1940 = vmatprep.subr.mxu0 %v2130_v7 }
  0x8c   :  { %1968 = vmatpush3.msra.mxu1 %v1102_v46  ;;  %1941 = vmatpush3.msra.mxu0 %v3019_v13  ;;  %v1144_v46 = vand.u32 4294901760, %v1143_v8  ;;  %v3355_v32 = vand.u32 4294901760, %v3087_v28 }
  0x8d   :  { %1969 = vmatprep.subr.mxu1 %v2130_v7  ;;  %1942 = vmatprep.subr.mxu0 %v2130_v7 }
  0x8e   :  { %1970 = vmatpush3.msra.mxu1 %v1109_v41  ;;  %1943 = vmatpush3.msra.mxu0 %v3029_v36  ;;  %v1151_v41 = vand.u32 4294901760, %v1150_v61  ;;  %v1157_v63 = vsub.f32 %v3087_v28, %v3355_v32 }
  0x8f   :  { %1971 = vmatprep.subr.mxu1 %v2130_v7  ;;  %1944 = vmatprep.subr.mxu0 %v2130_v7 }
  0x90   :  { %1972 = vmatpush3.msra.mxu1 %v1116_v37  ;;  %1945 = vmatpush3.msra.mxu0 %v3046_v25  ;;  %v1158_v47 = vand.u32 4294901760, %v1157_v63 }
  0x91   :  { %1973 = vmatprep.subr.mxu1 %v2130_v7  ;;  %1946 = vmatprep.subr.mxu0 %v2130_v7 }
  0x92   :  { %1974 = vmatpush3.msra.mxu1 %v1123_v26  ;;  %1947 = vmatpush3.msra.mxu0 %v3059_v0 }
  0x93   :  { %1975 = vmatprep.subr.mxu1 %v2130_v7  ;;  %1948 = vmatprep.subr.mxu0 %v2130_v7 }
  0x94   :  { %1976 = vmatpush3.msra.mxu1 %v1130_v22  ;;  %1949 = vmatpush3.msra.mxu0 %v3077_v15 }
  0x95   :  { %1977 = vmatprep.subr.mxu1 %v2130_v7  ;;  %1988 = vmatprep.subr.mxu0 %v2130_v7 }
  0x96   :  { %1978 = vmatpush3.msra.mxu1 %v1137_v24 }
  0x97   :  { %1979 = vmatprep.subr.mxu1 %v2130_v7 }
  0x98   :  { %1980 = vmatpush3.msra.mxu1 %v1144_v46 }
  0x99   :  { %1981 = vmatprep.subr.mxu1 %v2130_v7 }
  0x9a   :  { %1982 = vmatpush3.msra.mxu1 %v1151_v41 }
  0x9b   :  { %1983 = vmatprep.subr.mxu1 %v2130_v7 }
  0x9c   :  { %1984 = vmatpush3.msra.mxu1 %v1158_v47 }
  0x9d   :  { %2023 = vmatprep.subr.mxu1 %v2130_v7 }
  0xee   :  { %v1638_v37 = vpop.f32.mrf.mxu0 }
  0xf0   :  { %v1639_v52 = vpop.f32.mrf.mxu0 }
  0xf1   :  { %v1640_v4 = vadd.f32 %v1639_v52, %v1638_v37 }
  0xf3   :  { %v180_v46 = vadd.f32 %v1640_v4, %v1603_v5 }
  0xf4   :  { %v1673_v35 = vpop.f32.mrf.mxu1 }
  0xf6   :  { %v1674_v3 = vpop.f32.mrf.mxu1 }
  0xf7   :  { %v1675_v61 = vadd.f32 %v1674_v3, %v1673_v35 }
  0xf9   :  { %v412_v32 = vadd.f32 %v1675_v61, %v180_v46 }
 0x10e   :  { %v1708_v26 = vpop.f32.mrf.mxu0 }
 0x110   :  { %v1709_v22 = vpop.f32.mrf.mxu0 }
 0x111   :  { %v1710_v63 = vadd.f32 %v1709_v22, %v1708_v26 }
 0x113   :  { %v550_v9 = vadd.f32 %v1710_v63, %v412_v32 }
 0x116   :  { %v1743_v24 = vpop.f32.mrf.mxu1 }
 0x118   :  { %v1744_v41 = vpop.f32.mrf.mxu1 }
 0x119   :  { %v1745_v42 = vadd.f32 %v1744_v41, %v1743_v24 }
 0x11b   :  { %v658_v30 = vadd.f32 %v1745_v42, %v550_v9 }
 0x12f   :  { %v1778_v8 = vpop.f32.mrf.mxu0 }
 0x131   :  { %v1779_v47 = vpop.f32.mrf.mxu0 }
 0x132   :  { %v1780_v40 = vadd.f32 %v1779_v47, %v1778_v8 }
 0x134   :  { %v826_v37 = vadd.f32 %v1780_v40, %v658_v30 }
 0x138   :  { %v1813_v14 = vpop.f32.mrf.mxu1 }
 0x13a   :  { %v1814_v2 = vpop.f32.mrf.mxu1 }
 0x13b   :  { %v1815_v52 = vadd.f32 %v1814_v2, %v1813_v14 }
 0x13d   :  { %v930_v48 = vadd.f32 %v1815_v52, %v826_v37 }
 0x13f   :  { %v933_v34 = vmax.f32 %v930_v48, 0.0 }
 0x141   :  { %v3112_v45 = vand.u32 4294901760, %v933_v34 }
 0x143   :  { %v3115_v31 = vsub.f32 %v933_v34, %v3112_v45  ;;  %1986 = vmatmul.mubr.f32.vlgmr.msra.gmra.mxu1 %v3112_v45 }
 0x144   :  { %2024 = vmatpush3.msra.mxu1 %v2866_v50  ;;  %2055 = vmatprep.mubr.msk.f32.mxu1 %vm2131_vm0, %v2130_v7 }
 0x145   :  { %v1040_v32 = vand.u32 4294901760, %v3115_v31  ;;  %2025 = vmatprep.subr.mxu1 %v2130_v7 }
 0x146   :  { %2026 = vmatpush3.msra.mxu1 %v2874_v56 }
 0x147   :  { %2027 = vmatprep.subr.mxu1 %v2130_v7  ;;  %v1041_v48 = vsub.f32 %v3115_v31, %v1040_v32 }
 0x148   :  { %2028 = vmatpush3.msra.mxu1 %v2886_v49 }
 0x149   :  { %2029 = vmatprep.subr.mxu1 %v2130_v7  ;;  %v1042_v34 = vand.u32 4294901760, %v1041_v48 }
 0x14a   :  { %2030 = vmatpush3.msra.mxu1 %v2888_v27 }
 0x14b   :  { %2031 = vmatprep.subr.mxu1 %v2130_v7  ;;  %1951 = vmatmul.mubr.f32.vlgmr.msra.gmra.mxu0 %v1042_v34 }
 0x14c   :  { %1989 = vmatpush3.msra.mxu0 %v2872_v39  ;;  %2032 = vmatpush3.msra.mxu1 %v2891_v51  ;;  %v3460_v39 = vand.u32 4294901760, %v2927_v29 }
 0x14d   :  { %1990 = vmatprep.subr.mxu0 %v2130_v7  ;;  %2033 = vmatprep.subr.mxu1 %v2130_v7 }
 0x14e   :  { %1991 = vmatpush3.msra.mxu0 %v2901_v44  ;;  %2034 = vmatpush3.msra.mxu1 %v2904_v58  ;;  %v3466_v44 = vand.u32 4294901760, %v3044_v23 }
 0x14f   :  { %1992 = vmatprep.subr.mxu0 %v2130_v7  ;;  %2035 = vmatprep.subr.mxu1 %v2130_v7 }
 0x150   :  { %1993 = vmatpush3.msra.mxu0 %v2909_v1  ;;  %2036 = vmatpush3.msra.mxu1 %v2906_v54  ;;  %v3469_v1 = vand.u32 4294901760, %v3087_v28 }
 0x151   :  { %1994 = vmatprep.subr.mxu0 %v2130_v7  ;;  %2037 = vmatprep.subr.mxu1 %v2130_v7 }
 0x152   :  { %1995 = vmatpush3.msra.mxu0 %v2912_v57  ;;  %2038 = vmatpush3.msra.mxu1 %v2964_v10 }
 0x153   :  { %1996 = vmatprep.subr.mxu0 %v2130_v7  ;;  %2039 = vmatprep.subr.mxu1 %v2130_v7 }
 0x154   :  { %1997 = vmatpush3.msra.mxu0 %v2915_v12  ;;  %2040 = vmatpush3.msra.mxu1 %v2975_v17 }
 0x155   :  { %1998 = vmatprep.subr.mxu0 %v2130_v7  ;;  %2041 = vmatprep.subr.mxu1 %v2130_v7 }
 0x156   :  { %1999 = vmatpush3.msra.mxu0 %v2924_v19  ;;  %2042 = vmatpush3.msra.mxu1 %v2987_v60 }
 0x157   :  { %2000 = vmatprep.subr.mxu0 %v2130_v7  ;;  %2043 = vmatprep.subr.mxu1 %v2130_v7 }
 0x158   :  { %2001 = vmatpush3.msra.mxu0 %v2927_v29  ;;  %2044 = vmatpush3.msra.mxu1 %v3002_v6 }
 0x159   :  { %2002 = vmatprep.subr.mxu0 %v2130_v7  ;;  %2045 = vmatprep.subr.mxu1 %v2130_v7 }
 0x15a   :  { %2003 = vmatpush3.msra.mxu0 %v2973_v16  ;;  %2046 = vmatpush3.msra.mxu1 %v3019_v13 }
 0x15b   :  { %2004 = vmatprep.subr.mxu0 %v2130_v7  ;;  %2047 = vmatprep.subr.mxu1 %v2130_v7 }
 0x15c   :  { %2005 = vmatpush3.msra.mxu0 %v2985_v55  ;;  %2048 = vmatpush3.msra.mxu1 %v3029_v36 }
 0x15d   :  { %2006 = vmatprep.subr.mxu0 %v2130_v7  ;;  %2049 = vmatprep.subr.mxu1 %v2130_v7 }
 0x15e   :  { %2007 = vmatpush3.msra.mxu0 %v3000_v21  ;;  %2050 = vmatpush3.msra.mxu1 %v3046_v25 }
 0x15f   :  { %2008 = vmatprep.subr.mxu0 %v2130_v7  ;;  %2051 = vmatprep.subr.mxu1 %v2130_v7 }
 0x160   :  { %2009 = vmatpush3.msra.mxu0 %v3015_v62  ;;  %2052 = vmatpush3.msra.mxu1 %v3059_v0 }
 0x161   :  { %2010 = vmatprep.subr.mxu0 %v2130_v7  ;;  %2053 = vmatprep.subr.mxu1 %v2130_v7 }
 0x162   :  { %2011 = vmatpush3.msra.mxu0 %v3034_v20  ;;  %2054 = vmatpush3.msra.mxu1 %v3077_v15 }
 0x163   :  { %2012 = vmatprep.subr.mxu0 %v2130_v7  ;;  %2056 = vmatmul.mubr.f32.vlgmr.msra.gmra.mxu1 %v1040_v32 }
 0x164   :  { %2093 = vmatprep.subr.mxu1 %v2130_v7  ;;  %2013 = vmatpush3.msra.mxu0 %v3044_v23 }
 0x165   :  { %2094 = vmatpush3.msra.mxu1 %v2866_v50  ;;  %2014 = vmatprep.subr.mxu0 %v2130_v7  ;;  %v3459_v50 = vand.u32 4294901760, %v2924_v19 }
 0x166   :  { %2095 = vmatprep.subr.mxu1 %v2130_v7  ;;  %2015 = vmatpush3.msra.mxu0 %v3057_v59 }
 0x167   :  { %2096 = vmatpush3.msra.mxu1 %v2874_v56  ;;  %2016 = vmatprep.subr.mxu0 %v2130_v7  ;;  %v3461_v56 = vand.u32 4294901760, %v2973_v16 }
 0x168   :  { %2097 = vmatprep.subr.mxu1 %v2130_v7  ;;  %2017 = vmatpush3.msra.mxu0 %v3075_v11 }
 0x169   :  { %2098 = vmatpush3.msra.mxu1 %v2886_v49  ;;  %2018 = vmatprep.subr.mxu0 %v2130_v7  ;;  %v3462_v49 = vand.u32 4294901760, %v2985_v55 }
 0x16a   :  { %2099 = vmatprep.subr.mxu1 %v2130_v7  ;;  %2019 = vmatpush3.msra.mxu0 %v3087_v28 }
 0x16b   :  { %2020 = vmatprep.mubr.msk.f32.mxu0 %vm2131_vm0, %v2130_v7  ;;  %2100 = vmatpush3.msra.mxu1 %v2888_v27  ;;  %v3463_v27 = vand.u32 4294901760, %v3000_v21 }
 0x16c   :  { %2021 = vmatmul.mubr.f32.vlgmr.msra.gmra.mxu0 %v3115_v31  ;;  %2058 = vmatprep.subr.mxu0 %v2130_v7  ;;  %v1605_v31 = vld [vmem:[%s3283_s4] ss:$0 sm:$0xff] }
 0x16d   :  { %2101 = vmatprep.subr.mxu1 %v2130_v7  ;;  %2059 = vmatpush3.msra.mxu0 %v1051_v53  ;;  %v3465_v53 = vand.u32 4294901760, %v3034_v20 }
 0x16e   :  { %2102 = vmatpush3.msra.mxu1 %v2891_v51  ;;  %2060 = vmatprep.subr.mxu0 %v2130_v7  ;;  %v3464_v51 = vand.u32 4294901760, %v3015_v62 }
 0x16f   :  { %2103 = vmatprep.subr.mxu1 %v2130_v7  ;;  %2061 = vmatpush3.msra.mxu0 %v1058_v33 }
 0x170   :  { %2104 = vmatpush3.msra.mxu1 %v2904_v58  ;;  %2062 = vmatprep.subr.mxu0 %v2130_v7  ;;  %v3467_v58 = vand.u32 4294901760, %v3057_v59 }
 0x171   :  { %2105 = vmatprep.subr.mxu1 %v2130_v7  ;;  %2063 = vmatpush3.msra.mxu0 %v1065_v43 }
 0x172   :  { %2106 = vmatpush3.msra.mxu1 %v2906_v54  ;;  %2064 = vmatprep.subr.mxu0 %v2130_v7  ;;  %v3468_v54 = vand.u32 4294901760, %v3075_v11 }
 0x173   :  { %2107 = vmatprep.subr.mxu1 %v2130_v7  ;;  %2065 = vmatpush3.msra.mxu0 %v1072_v18 }
 0x174   :  { %2108 = vmatpush3.msra.mxu1 %v2964_v10  ;;  %2066 = vmatprep.subr.mxu0 %v2130_v7 }
 0x175   :  { %2109 = vmatprep.subr.mxu1 %v2130_v7  ;;  %2067 = vmatpush3.msra.mxu0 %v1079_v38 }
 0x176   :  { %2110 = vmatpush3.msra.mxu1 %v2975_v17  ;;  %2068 = vmatprep.subr.mxu0 %v2130_v7 }
 0x177   :  { %2111 = vmatprep.subr.mxu1 %v2130_v7  ;;  %2069 = vmatpush3.msra.mxu0 %v3459_v50 }
 0x178   :  { %2112 = vmatpush3.msra.mxu1 %v2987_v60  ;;  %2070 = vmatprep.subr.mxu0 %v2130_v7 }
 0x179   :  { %2113 = vmatprep.subr.mxu1 %v2130_v7  ;;  %2071 = vmatpush3.msra.mxu0 %v3460_v39 }
 0x17a   :  { %2114 = vmatpush3.msra.mxu1 %v3002_v6  ;;  %2072 = vmatprep.subr.mxu0 %v2130_v7 }
 0x17b   :  { %2115 = vmatprep.subr.mxu1 %v2130_v7  ;;  %2073 = vmatpush3.msra.mxu0 %v3461_v56 }
 0x17c   :  { %2116 = vmatpush3.msra.mxu1 %v3019_v13  ;;  %2074 = vmatprep.subr.mxu0 %v2130_v7 }
 0x17d   :  { %2117 = vmatprep.subr.mxu1 %v2130_v7  ;;  %2075 = vmatpush3.msra.mxu0 %v3462_v49 }
 0x17e   :  { %2118 = vmatpush3.msra.mxu1 %v3029_v36  ;;  %2076 = vmatprep.subr.mxu0 %v2130_v7 }
 0x17f   :  { %2119 = vmatprep.subr.mxu1 %v2130_v7  ;;  %2077 = vmatpush3.msra.mxu0 %v3463_v27 }
 0x180   :  { %2120 = vmatpush3.msra.mxu1 %v3046_v25  ;;  %2078 = vmatprep.subr.mxu0 %v2130_v7 }
 0x181   :  { %2121 = vmatprep.subr.mxu1 %v2130_v7  ;;  %2079 = vmatpush3.msra.mxu0 %v3464_v51 }
 0x182   :  { %2122 = vmatpush3.msra.mxu1 %v3059_v0  ;;  %2080 = vmatprep.subr.mxu0 %v2130_v7 }
 0x183   :  { %2123 = vmatprep.subr.mxu1 %v2130_v7  ;;  %2081 = vmatpush3.msra.mxu0 %v3465_v53 }
 0x184   :  { %2124 = vmatpush3.msra.mxu1 %v3077_v15  ;;  %2125 = vmatprep.mubr.msk.f32.mxu1 %vm2131_vm0, %v2130_v7 }
 0x185   :  { %2082 = vmatprep.subr.mxu0 %v2130_v7  ;;  %2126 = vmatmul.mubr.f32.vlgmr.msra.gmra.mxu1 %v3112_v45 }
 0x186   :  { %2083 = vmatpush3.msra.mxu0 %v3466_v44  ;;  %2090 = vmatprep.mubr.msk.f32.mxu0 %vm2131_vm0, %v2130_v7 }
 0x187   :  { %2084 = vmatprep.subr.mxu0 %v2130_v7 }
 0x188   :  { %2085 = vmatpush3.msra.mxu0 %v3467_v58 }
 0x189   :  { %2086 = vmatprep.subr.mxu0 %v2130_v7 }
 0x18a   :  { %2087 = vmatpush3.msra.mxu0 %v3468_v54 }
 0x18b   :  { %2088 = vmatprep.subr.mxu0 %v2130_v7 }
 0x18c   :  { %2089 = vmatpush3.msra.mxu0 %v3469_v1 }
 0x18d   :  { %2091 = vmatmul.mubr.f32.vlgmr.msra.gmra.mxu0 %v3112_v45 }
 0x203   :  { %v1195_v57 = vpop.f32.mrf.mxu1 }
 0x205   :  { %v1987_v12 = vpop.f32.mrf.mxu1 }
 0x20b   :  { %v1044_v33 = vpop.f32.mrf.mxu0 }
 0x20c   :  { %v1045_v10 = vadd.f32 %v1605_v31, %v1044_v33 }
 0x20d   :  { %v1952_v19 = vpop.f32.mrf.mxu0 }
 0x20e   :  { %v1196_v7 = vadd.f32 %v1195_v57, %v1045_v10 }
 0x223   :  { %v1388_v29 = vpop.f32.mrf.mxu1 }
 0x225   :  { %v2057_v43 = vpop.f32.mrf.mxu1 }
 0x22c   :  { %v1299_v18 = vpop.f32.mrf.mxu0 }
 0x22d   :  { %v1300_v55 = vadd.f32 %v1299_v18, %v1196_v7 }
 0x22e   :  { %v2022_v38 = vpop.f32.mrf.mxu0 }
 0x22f   :  { %v1389_v60 = vadd.f32 %v1388_v29, %v1300_v55 }
 0x245   :  { %v1594_v16 = vpop.f32.mrf.mxu1 }
 0x247   :  { %v2127_v17 = vpop.f32.mrf.mxu1 }
 0x24d   :  { %v1507_v21 = vpop.f32.mrf.mxu0 }
 0x24e   :  { %v1508_v45 = vadd.f32 %v1507_v21, %v1389_v60 }
 0x24f   :  { %v2092_v6 = vpop.f32.mrf.mxu0 }
 0x250   :  { %v1595_v2 = vadd.f32 %v1594_v16, %v1508_v45 }
 0x252   :  { %1598 = vst [vmem:[%s3284_s5] sm:$0x3] %v1595_v2 }

</bundles_post_ra>
